<compile_context>
chip_gen: v6e
topology: v6e:2x2x1
jax: 0.10.0
libtpu: 0.0.40
codegen_flags: <defaults>
</compile_context>

<pallas_src>
import math
import functools

import jax
import jax.numpy as jnp
from jax.experimental import pallas as pl
from jax.experimental.pallas import tpu as pltpu


# Tile caps. Big enough to amortize the ~0.35us per-grid-step overhead and
# fill the MXU, small enough for every generation's scoped-VMEM default.
_TM_MAX = 512
_TN_MAX = 256
_TK_MAX = 512


def _round_up(v: int, m: int) -> int:
    return ((v + m - 1) // m) * m


def _softplus_f32(w):
    # Numerically stable softplus: max(w, 0) + log1p(exp(-|w|)), in f32.
    w = w.astype(jnp.float32)
    return jnp.maximum(w, 0.0) + jnp.log1p(jnp.exp(-jnp.abs(w)))


def _positive_linear_kernel_acc(x_ref, wt_ref, b_ref, o_ref, acc_ref):
    # General path: K split across grid axis 2, f32 accumulator resident.
    # x_ref: (tm, tk)  wt_ref: (tk, tn)  b_ref: (1, tn)  o_ref/acc_ref: (tm, tn)
    k = pl.program_id(2)

    @pl.when(k == 0)
    def _init():
        acc_ref[...] = jnp.zeros_like(acc_ref)

    pos_w = _softplus_f32(wt_ref[...]).astype(x_ref.dtype)
    acc_ref[...] += jnp.dot(x_ref[...], pos_w,
                            preferred_element_type=jnp.float32)

    @pl.when(k == pl.num_programs(2) - 1)
    def _finalize():
        out = acc_ref[...] + b_ref[...].astype(jnp.float32)
        o_ref[...] = out.astype(o_ref.dtype)


def _positive_linear_kernel_single_k(x_ref, wt_ref, b_ref, o_ref):
    # Fast path: whole K fits in one block -> no scratch, direct fused store.
    pos_w = _softplus_f32(wt_ref[...]).astype(x_ref.dtype)
    acc = jnp.dot(x_ref[...], pos_w, preferred_element_type=jnp.float32)
    o_ref[...] = (acc + b_ref[...].astype(jnp.float32)).astype(o_ref.dtype)


@jax.jit
def positive_linear(x, weight, bias=None):
    """Pallas implementation of PositiveLinear.forward.

    x:      (..., in_features)
    weight: (out_features, in_features)
    bias:   (out_features,) or None
    returns (..., out_features)
    """
    out_features, in_features = weight.shape
    lead_shape = x.shape[:-1]
    x2d = x.reshape((-1, in_features))
    M, K, N = x2d.shape[0], in_features, out_features

    # Tile sizes: (8, 128)-aligned, capped for the VMEM budget.
    tm = min(_TM_MAX, _round_up(M, 8))
    tk = min(_TK_MAX, _round_up(K, 128))
    tn = min(_TN_MAX, _round_up(N, 128))
    Mp, Kp, Np = _round_up(M, tm), _round_up(K, tk), _round_up(N, tn)

    # Pre-transpose weight to (K, N): no in-kernel transpose, lane-dense output.
    w_t = jnp.transpose(weight)

    # Zero-pad to tile multiples. x's zero K-padding guarantees the (nonzero)
    # softplus of padded weight rows never contributes to the result.
    x_p = jnp.pad(x2d, ((0, Mp - M), (0, Kp - K)))
    w_p = jnp.pad(w_t, ((0, Kp - K), (0, Np - N)))
    if bias is None:
        b_p = jnp.zeros((1, Np), weight.dtype)
    else:
        b_p = jnp.pad(bias, (0, Np - N)).reshape((1, Np))

    n_k = Kp // tk
    cost = pl.CostEstimate(
        flops=2 * Mp * Np * Kp,
        transcendentals=(Mp // tm) * Kp * Np,   # softplus recomputed per M-tile visit
        bytes_accessed=(x_p.size * x_p.dtype.itemsize
                        + (Mp // tm) * w_p.size * w_p.dtype.itemsize
                        + Mp * Np * x.dtype.itemsize),
    )

    if n_k == 1:
        # Single K block: 2-D grid, no accumulator scratch.
        y_p = pl.pallas_call(
            _positive_linear_kernel_single_k,
            out_shape=jax.ShapeDtypeStruct((Mp, Np), x.dtype),
            grid_spec=pltpu.PrefetchScalarGridSpec(
                num_scalar_prefetch=0,
                grid=(Mp // tm, Np // tn),
                in_specs=[
                    pl.BlockSpec((tm, tk), lambda i, j: (i, 0)),   # x
                    pl.BlockSpec((tk, tn), lambda i, j: (0, j)),   # W^T (pre-softplus)
                    pl.BlockSpec((1, tn), lambda i, j: (0, j)),    # bias
                ],
                out_specs=pl.BlockSpec((tm, tn), lambda i, j: (i, j)),
            ),
            compiler_params=pltpu.CompilerParams(
                dimension_semantics=("parallel", "parallel")),
            cost_estimate=cost,
        )(x_p, w_p, b_p)
    else:
        y_p = pl.pallas_call(
            _positive_linear_kernel_acc,
            out_shape=jax.ShapeDtypeStruct((Mp, Np), x.dtype),
            grid_spec=pltpu.PrefetchScalarGridSpec(
                num_scalar_prefetch=0,
                grid=(Mp // tm, Np // tn, n_k),
                in_specs=[
                    pl.BlockSpec((tm, tk), lambda i, j, k: (i, k)),   # x
                    pl.BlockSpec((tk, tn), lambda i, j, k: (k, j)),   # W^T (pre-softplus)
                    pl.BlockSpec((1, tn), lambda i, j, k: (0, j)),    # bias
                ],
                out_specs=pl.BlockSpec((tm, tn), lambda i, j, k: (i, j)),
                scratch_shapes=[pltpu.VMEM((tm, tn), jnp.float32)],
            ),
            compiler_params=pltpu.CompilerParams(
                dimension_semantics=("parallel", "parallel", "arbitrary")),
            cost_estimate=cost,
        )(x_p, w_p, b_p)

    y = y_p[:M, :N]
    return y.reshape(lead_shape + (N,))


def init_positive_linear_params(key, in_features, out_features,
                                bias=True, weight_init_offset=-2):
    """Deterministic re-implementation of PositiveLinear.reset_parameters."""
    kw, kb = jax.random.split(key)
    # kaiming_uniform_(a=sqrt(5)) for a (out, in) weight:
    #   gain = sqrt(2/(1+a^2)) = sqrt(1/3); bound = gain*sqrt(3/fan_in) = 1/sqrt(fan_in)
    fan_in = in_features
    w_bound = 1.0 / math.sqrt(fan_in)
    weight = jax.random.uniform(
        kw, (out_features, in_features), jnp.float32, -w_bound, w_bound)
    weight = weight + weight_init_offset
    if bias:
        b_bound = 1.0 / math.sqrt(fan_in) if fan_in > 0 else 0.0
        b = jax.random.uniform(kb, (out_features,), jnp.float32, -b_bound, b_bound)
    else:
        b = None
    return weight, b


def positive_linear_reference(x, weight, bias=None):
    pos_w = jax.nn.softplus(weight)
    y = x @ pos_w.T
    if bias is not None:
        y = y + bias
    return y


if __name__ == "__main__":
    key = jax.random.PRNGKey(0)
    k1, k2, k3, k4 = jax.random.split(key, 4)

    # --- Small shape, typical of where PositiveLinear is used (GammaNetwork). ---
    # Exercises the single-K fast path (2-D grid, no scratch accumulator).
    B, K, N = 8, 32, 64
    x = jax.random.normal(k1, (B, K), jnp.float32)
    weight, bias = init_positive_linear_params(
        k2, K, N, bias=True, weight_init_offset=-2)

    y = jax.block_until_ready(positive_linear(x, weight, bias))
    y_ref = positive_linear_reference(x, weight, bias)
    assert y.shape == (B, N)
    assert jnp.allclose(y, y_ref, atol=1e-4, rtol=1e-4), (
        float(jnp.max(jnp.abs(y - y_ref))))

    # --- No-bias path. ---
    y_nb = jax.block_until_ready(positive_linear(x, weight, None))
    y_nb_ref = positive_linear_reference(x, weight, None)
    assert jnp.allclose(y_nb, y_nb_ref, atol=1e-4, rtol=1e-4), (
        float(jnp.max(jnp.abs(y_nb - y_nb_ref))))

    # --- Larger shape exercising the full (M, N, K) grid + K accumulator. ---
    B2, K2, N2 = 512, 1024, 320
    x2 = jax.random.normal(k3, (B2, K2), jnp.float32)
    w2, b2 = init_positive_linear_params(
        k4, K2, N2, bias=True, weight_init_offset=-2)
    y2 = jax.block_until_ready(positive_linear(x2, w2, b2))
    y2_ref = positive_linear_reference(x2, w2, b2)
    assert y2.shape == (B2, N2)
    assert jnp.allclose(y2, y2_ref, atol=1e-2, rtol=1e-2), (
        float(jnp.max(jnp.abs(y2 - y2_ref))))

    print("KERNEL_OK")
</pallas_src>

<mosaic_0001>
module attributes {stable_mosaic.version = 11 : i64} {
  func.func @_positive_linear_kernel_single_k(%arg0: i32, %arg1: i32, %arg2: memref<8x128xf32, #tpu.memory_space<vmem>>, %arg3: memref<128x128xf32, #tpu.memory_space<vmem>>, %arg4: memref<1x128xf32, #tpu.memory_space<vmem>>, %arg5: memref<8x128xf32, #tpu.memory_space<vmem>>) attributes {dimension_semantics = [#tpu.dimension_semantics<parallel>, #tpu.dimension_semantics<parallel>], iteration_bounds = array<i64: 1, 1>, scalar_prefetch = 0 : i64, scratch_operands = 0 : i64, tpu.core_type = #tpu.core_type<tc>, window_params = [{transform_indices = @transform_0, window_bounds = array<i64: 8, 128>}, {transform_indices = @transform_1, window_bounds = array<i64: 128, 128>}, {transform_indices = @transform_2, window_bounds = array<i64: 1, 128>}, {transform_indices = @transform_3, window_bounds = array<i64: 8, 128>}]} {
    %c0 = arith.constant 0 : index
    %c0_0 = arith.constant 0 : index
    %0 = vector.load %arg3[%c0, %c0_0] : memref<128x128xf32, #tpu.memory_space<vmem>>, vector<128x128xf32>
    %cst = arith.constant 0.000000e+00 : f32
    %1 = vector.broadcast %cst : f32 to vector<128x128xf32>
    %2 = arith.maximumf %0, %1 : vector<128x128xf32>
    %3 = math.absf %0 : vector<128x128xf32>
    %cst_1 = arith.constant 0.000000e+00 : f32
    %4 = vector.broadcast %cst_1 : f32 to vector<128x128xf32>
    %5 = arith.subf %4, %3 : vector<128x128xf32>
    %6 = math.exp %5 : vector<128x128xf32>
    %7 = math.log1p %6 : vector<128x128xf32>
    %8 = arith.addf %2, %7 : vector<128x128xf32>
    %c0_2 = arith.constant 0 : index
    %c0_3 = arith.constant 0 : index
    %9 = vector.load %arg2[%c0_2, %c0_3] : memref<8x128xf32, #tpu.memory_space<vmem>>, vector<8x128xf32>
    %cst_4 = arith.constant dense<0.000000e+00> : vector<8x128xf32>
    %10 = tpu.matmul %9, %8, %cst_4 {dimension_numbers = #tpu.dot_dimension_numbers<[1], [0], [0], [1], [0, 0, 1, 1], [], []>} : vector<8x128xf32>, vector<128x128xf32>, vector<8x128xf32> -> vector<8x128xf32>
    %c0_5 = arith.constant 0 : index
    %c0_6 = arith.constant 0 : index
    %11 = vector.load %arg4[%c0_5, %c0_6] : memref<1x128xf32, #tpu.memory_space<vmem>>, vector<1x128xf32>
    %12 = vector.broadcast %11 : vector<1x128xf32> to vector<8x128xf32>
    %13 = arith.addf %10, %12 : vector<8x128xf32>
    %c0_7 = arith.constant 0 : index
    %c0_8 = arith.constant 0 : index
    %14 = vector.load %arg5[%c0_7, %c0_8] : memref<8x128xf32, #tpu.memory_space<vmem>>, vector<8x128xf32>
    tpu.vector_store %arg5[%c0_7, %c0_8], %13 {strides = array<i32>} : memref<8x128xf32, #tpu.memory_space<vmem>>, vector<8x128xf32>,
    return
  }
  func.func @transform_0(%arg0: i32, %arg1: i32) -> (i32, i32) {
    %c0_i32 = arith.constant 0 : i32
    %c0_i32_0 = arith.constant 0 : i32
    return %arg0, %c0_i32 : i32, i32
  }
  func.func @transform_1(%arg0: i32, %arg1: i32) -> (i32, i32) {
    %c0_i32 = arith.constant 0 : i32
    %c0_i32_0 = arith.constant 0 : i32
    return %c0_i32, %arg1 : i32, i32
  }
  func.func @transform_2(%arg0: i32, %arg1: i32) -> (i32, i32) {
    %c0_i32 = arith.constant 0 : i32
    %c0_i32_0 = arith.constant 0 : i32
    return %c0_i32, %arg1 : i32, i32
  }
  func.func @transform_3(%arg0: i32, %arg1: i32) -> (i32, i32) {
    %c0_i32 = arith.constant 0 : i32
    return %arg0, %arg1 : i32, i32
  }
}

</mosaic_0001>

<bundles_post_ra>
// kernel: positive_linear.1
= control target key start
LH: loop header
LB: loop body
LE: loop exit
PB: predicated region body
PF: predicated region fallthrough
CT: control target
= control target key end

     0   :  { %v506_v3 = vmov 0.0   ;;  %vm507_vm0 = vmmov 0   ;;  %s807_s0 = inlined_call_operand.vmem [shape: f32[8,128], index: 0, kind: input, shape index: {}]   ;;  %s808_s1 = inlined_call_operand.vmem [shape: f32[128,128], index: 1, kind: input, shape index: {}]   ;;  %s809_s2 = inlined_call_operand.vmem [shape: f32[1,128], index: 2, kind: input, shape index: {}]   ;;  %s810_s3 = inlined_call_operand.hbm [shape: f32[8,128], index: 3, kind: output, shape index: {}]  }
   0x1   :  { %v532_v0 = vld [vmem:[%s808_s1 + $0x78] sm:$0xff]  ;;  %v537_v1 = vld [vmem:[%s808_s1 + $0x70] sm:$0xff]  ;;  %v542_v2 = vld [vmem:[%s808_s1 + $0x68] sm:$0xff]  ;;  %382 = vmatprep.subr.mxu0 %v506_v3  ;;  %414 = vmatprep.mubr.msk.f32.mxu0 %vm507_vm0, %v506_v3 }
   0x2   :  { %v62_v4 = vand.u32 2147483647, %v532_v0  ;;  %v61_v5 = vand.u32 2147483647, %v537_v1  ;;  %v60_v6 = vand.u32 2147483647, %v542_v2 }
   0x3   :  { %v552_v7 = vld [vmem:[%s808_s1 + $0x60] sm:$0xff]  ;;  %v557_v8 = vld [vmem:[%s808_s1 + $0x58] sm:$0xff]  ;;  %v563_v12 = vld [vmem:[%s808_s1 + $0x50] sm:$0xff] }
   0x4   :  { %v78_v9 = vsub.f32 0.0, %v62_v4  ;;  %v77_v10 = vsub.f32 0.0, %v61_v5  ;;  %v59_v11 = vand.u32 2147483647, %v552_v7  ;;  %v76_v13 = vsub.f32 0.0, %v60_v6  ;;  %v569_v15 = vld [vmem:[%s808_s1 + $0x48] sm:$0xff] }
   0x5   :  { %v58_v14 = vand.u32 2147483647, %v557_v8  ;;  %v574_v16 = vld [vmem:[%s808_s1 + $0x40] sm:$0xff]  ;;  %v57_v22 = vand.u32 2147483647, %v563_v12  ;;  %v582_v28 = vld [vmem:[%s808_s1 + $0x38] sm:$0xff] }
   0x6   :  { %v109_v17 = vmul.f32 1.442695, %v78_v9  ;;  %v107_v18 = vmul.f32 1.442695, %v77_v10  ;;  %v75_v19 = vsub.f32 0.0, %v59_v11  ;;  %v587_v29 = vld [vmem:[%s808_s1 + $0x30] sm:$0xff] }
   0x7   :  { %v105_v20 = vmul.f32 1.442695, %v76_v13  ;;  %v74_v21 = vsub.f32 0.0, %v58_v14  ;;  %v56_v24 = vand.u32 2147483647, %v569_v15  ;;  %v73_v27 = vsub.f32 0.0, %v57_v22 }
   0x8   :  { %420 = vpow2.f32 %v109_v17  ;;  %v103_v23 = vmul.f32 1.442695, %v75_v19  ;;  %v55_v25 = vand.u32 2147483647, %v574_v16  ;;  %v592_v32 = vld [vmem:[%s808_s1 + $0x28] sm:$0xff]  ;;  %v598_v35 = vld [vmem:[%s808_s1 + $0x20] sm:$0xff] }
   0x9   :  { %422 = vpow2.f32 %v107_v18  ;;  %v101_v26 = vmul.f32 1.442695, %v74_v21  ;;  %v72_v30 = vsub.f32 0.0, %v56_v24  ;;  %v99_v33 = vmul.f32 1.442695, %v73_v27  ;;  %v605_v41 = vld [vmem:[%s808_s1 + $0x18] sm:$0xff] }
   0xa   :  { %424 = vpow2.f32 %v105_v20  ;;  %v71_v31 = vsub.f32 0.0, %v55_v25  ;;  %v54_v34 = vand.u32 2147483647, %v582_v28  ;;  %v53_v37 = vand.u32 2147483647, %v587_v29  ;;  %v611_v44 = vld [vmem:[%s808_s1 + $0x10] sm:$0xff] }
   0xb   :  { %426 = vpow2.f32 %v103_v23  ;;  %v97_v36 = vmul.f32 1.442695, %v72_v30  ;;  %v52_v40 = vand.u32 2147483647, %v592_v32  ;;  %v51_v43 = vand.u32 2147483647, %v598_v35 }
   0xc   :  { %428 = vpow2.f32 %v101_v26  ;;  %v95_v38 = vmul.f32 1.442695, %v71_v31  ;;  %v70_v39 = vsub.f32 0.0, %v54_v34  ;;  %v69_v42 = vsub.f32 0.0, %v53_v37 }
   0xd   :  { %430 = vpow2.f32 %v99_v33  ;;  %v68_v46 = vsub.f32 0.0, %v52_v40 }
   0xe   :  { %432 = vpow2.f32 %v97_v36  ;;  %v93_v45 = vmul.f32 1.442695, %v70_v39 }
   0xf   :  { %8 = vsyncpa [#allocation3], 0  ;;  %v67_v47 = vsub.f32 0.0, %v51_v43  ;;  %v50_v48 = vand.u32 2147483647, %v605_v41  ;;  %434 = vpow2.f32 %v95_v38  ;;  %v46_v54 = vmax.f32 %v532_v0, 0.0 }
  0x10   :  { %v91_v49 = vmul.f32 1.442695, %v69_v42  ;;  %v49_v50 = vand.u32 2147483647, %v611_v44  ;;  %v89_v51 = vmul.f32 1.442695, %v68_v46  ;;  %436 = vpow2.f32 %v93_v45 }
  0x11   :  { %v87_v52 = vmul.f32 1.442695, %v67_v47  ;;  %v66_v53 = vsub.f32 0.0, %v50_v48  ;;  %v45_v55 = vmax.f32 %v537_v1, 0.0  ;;  %v44_v56 = vmax.f32 %v542_v2, 0.0  ;;  %v622_v58 = vld [vmem:[%s808_s1 + $0x8] sm:$0xff] }
  0x12   :  { %v43_v57 = vmax.f32 %v552_v7, 0.0  ;;  %v42_v60 = vmax.f32 %v557_v8, 0.0  ;;  %v41_v61 = vmax.f32 %v563_v12, 0.0  ;;  %438 = vpow2.f32 %v91_v49  ;;  %v629_v63 = vld [vmem:[%s808_s1] sm:$0xff]  ;;  %s508_s20 = smov [#allocation2]  }
  0x13   :  { %v65_v62 = vsub.f32 0.0, %v49_v50  ;;  %v40_v6 = vmax.f32 %v569_v15, 0.0  ;;  %v39_v9 = vmax.f32 %v574_v16, 0.0  ;;  %440 = vpow2.f32 %v89_v51  ;;  %s356_s21 = sshll.u32 %s508_s20, 4  ;;  %s357_s21 = int_to_ptr.vmem [resolvable:$true] %s356_s21 }
  0x14   :  { %442 = vpow2.f32 %v87_v52  ;;  %v85_v13 = vmul.f32 1.442695, %v66_v53  ;;  %v48_v14 = vand.u32 2147483647, %v622_v58  ;;  %v38_v19 = vmax.f32 %v582_v28, 0.0  ;;  %s484_s22 = scalar_lea.vmem %s357_s21, 128  ;;  %p489_p1 = scmp.lt.s32.totalorder %s357_s21, %s357_s21 }
  0x15   :  { %v421_v59 = vpop.eup %420  ;;  %v47_v20 = vand.u32 2147483647, %v629_v63  ;;  %v83_v24 = vmul.f32 1.442695, %v65_v62  ;;  %p485_p0 = scmp.ne.s32.totalorder %s357_s21, %s484_s22  ;;  %p490_p2 = scmp.lt.s32.totalorder %s484_s22, %s484_s22 }
  0x16   :  { %v423_v4 = vpop.eup %422  ;;  %v246_v5 = vadd.f32 1.0, %v421_v59  ;;  %v249_v22 = vmul.f32 -0.5, %v421_v59  ;;  %v252_v23 = vand.u32 2147483647, %v421_v59  ;;  %v637_v34 = vsub.f32 0.0, %v48_v14 }
  0x17   :  { %v425_v10 = vpop.eup %424  ;;  %v237_v11 = vadd.f32 1.0, %v423_v4  ;;  %v240_v25 = vmul.f32 -0.5, %v423_v4  ;;  %v243_v31 = vand.u32 2147483647, %v423_v4  ;;  %v641_v39 = vsub.f32 0.0, %v47_v20  ;;  %p491_p3 = por %p490_p2, %p489_p1 }
  0x18   :  { %v427_v17 = vpop.eup %426  ;;  %444 = vlog2.f32 %v246_v5  ;;  %v228_v18 = vadd.f32 1.0, %v425_v10  ;;  %v231_v33 = vmul.f32 -0.5, %v425_v10  ;;  %v250_v40 = vadd.f32 1.0, %v249_v22 }
  0x19   :  { %v429_v21 = vpop.eup %428  ;;  %446 = vlog2.f32 %v237_v11  ;;  %v219_v26 = vadd.f32 1.0, %v427_v17  ;;  %v222_v37 = vmul.f32 -0.5, %v427_v17  ;;  %vm643_vm1 = vcmp.lt.f32.partialorder %v252_v23, 0.0004427343  ;;  %p492_p4 = pnand %p491_p3, %p485_p0 }
  0x1a   :  { %448 = vlog2.f32 %v228_v18  ;;  %v431_v30 = vpop.eup %430  ;;  %v210_v38 = vadd.f32 1.0, %v429_v21  ;;  %v213_v43 = vmul.f32 -0.5, %v429_v21  ;;  %v241_v46 = vadd.f32 1.0, %v240_v25 }
  0x1b   :  { %450 = vpow2.f32 %v85_v13  ;;  %v639_v36 = vpop.eup %432  ;;  %v201_v47 = vadd.f32 1.0, %v431_v30  ;;  %v204_v48 = vmul.f32 -0.5, %v431_v30  ;;  %vm649_vm2 = vcmp.lt.f32.partialorder %v243_v31, 0.0004427343 }
  0x1c   :  { %452 = vlog2.f32 %v219_v26  ;;  %v647_v45 = vpop.eup %434  ;;  %v232_v50 = vadd.f32 1.0, %v231_v33  ;;  %v234_v51 = vand.u32 2147483647, %v425_v10  ;;  %v192_v52 = vadd.f32 1.0, %v639_v36 }
  0x1d   :  { %454 = vpow2.f32 %v83_v24  ;;  %v654_v53 = vpop.eup %436  ;;  %v223_v62 = vadd.f32 1.0, %v222_v37  ;;  %v225_v5 = vand.u32 2147483647, %v427_v17  ;;  %v216_v11 = vand.u32 2147483647, %v429_v21 }
  0x1e   :  { %456 = vlog2.f32 %v210_v38  ;;  %v251_v13 = vmul.f32 %v421_v59, %v250_v40  ;;  %v214_v14 = vadd.f32 1.0, %v213_v43  ;;  %v183_v18 = vadd.f32 1.0, %v647_v45 }
  0x1f   :  { %458 = vlog2.f32 %v201_v47  ;;  %v657_v20 = vpop.eup %438  ;;  %v242_v22 = vmul.f32 %v423_v4, %v241_v46  ;;  %v205_v23 = vadd.f32 1.0, %v204_v48  ;;  %v207_v24 = vand.u32 2147483647, %v431_v30 }
  0x20   :  { %460 = vlog2.f32 %v192_v52  ;;  %v195_v25 = vmul.f32 -0.5, %v639_v36  ;;  %v660_v26 = vpop.eup %440  ;;  %vm662_vm3 = vcmp.lt.f32.partialorder %v234_v51, 0.0004427343  ;;  %v198_v33 = vand.u32 2147483647, %v639_v36 }
  0x21   :  { %462 = vlog2.f32 %v183_v18  ;;  %v174_v59 = vadd.f32 1.0, %v654_v53  ;;  %v668_v37 = vpop.eup %442  ;;  %v233_v38 = vmul.f32 %v425_v10, %v232_v50  ;;  %v224_v40 = vmul.f32 %v427_v17, %v223_v62 }
  0x22   :  { %vm670_vm4 = vcmp.lt.f32.partialorder %v225_v5, 0.0004427343  ;;  %vm674_vm5 = vcmp.lt.f32.partialorder %v216_v11, 0.0004427343  ;;  %v215_v47 = vmul.f32 %v429_v21, %v214_v14  ;;  %v186_v48 = vmul.f32 -0.5, %v647_v45 }
  0x23   :  { %464 = vlog2.f32 %v174_v59  ;;  %v165_v51 = vadd.f32 1.0, %v657_v20  ;;  %v206_v27 = vmul.f32 %v431_v30, %v205_v23  ;;  %vm680_vm6 = vcmp.lt.f32.partialorder %v207_v24, 0.0004427343 }
  0x24   :  { %v196_v17 = vadd.f32 1.0, %v195_v25  ;;  %vm684_vm7 = vcmp.lt.f32.partialorder %v198_v33, 0.0004427343  ;;  %v189_v21 = vand.u32 2147483647, %v647_v45  ;;  %v177_v23 = vmul.f32 -0.5, %v654_v53 }
  0x25   :  { %v445_v46 = vpop.eup %444  ;;  %466 = vlog2.f32 %v165_v51  ;;  %v156_v24 = vadd.f32 1.0, %v660_v26  ;;  %v168_v51 = vmul.f32 -0.5, %v657_v20  ;;  %v180_v49 = vand.u32 2147483647, %v654_v53 }
  0x26   :  { %v447_v52 = vpop.eup %446  ;;  %v248_v18 = vmul.f32 0.6931472, %v445_v46  ;;  %v187_v46 = vadd.f32 1.0, %v186_v48  ;;  %vm714_vm8 = vcmp.lt.f32.partialorder %v189_v21, 0.0004427343  ;;  %v159_v21 = vmul.f32 -0.5, %v660_v26 }
  0x27   :  { %v449_v50 = vpop.eup %448  ;;  %v239_v62 = vmul.f32 0.6931472, %v447_v52  ;;  %468 = vlog2.f32 %v156_v24  ;;  %vm728_vm9 = vcmp.lt.f32.partialorder %v180_v49, 0.0004427343  ;;  %v833_v49 = vmax.f32 %v587_v29, 0.0 }
  0x28   :  { %v689_v11 = vpop.eup %450  ;;  %v254_v14 = vsel %vm643_vm1, %v251_v13, %v248_v18  ;;  %v230_v30 = vmul.f32 0.6931472, %v449_v50  ;;  %v160_v10 = vadd.f32 1.0, %v159_v21 }
  0x29   :  { %v453_v25 = vpop.eup %452  ;;  %v270_v33 = vadd.f32 %v254_v14, %v46_v54  ;;  %v245_v59 = vsel %vm649_vm2, %v242_v22, %v239_v62  ;;  %v197_v54 = vmul.f32 %v639_v36, %v196_v17  ;;  %v147_v22 = vadd.f32 1.0, %v668_v37 }
  0x2a   :  { %v700_v52 = vpop.eup %454  ;;  %v269_v42 = vadd.f32 %v245_v59, %v45_v55  ;;  %v236_v13 = vsel %vm662_vm3, %v233_v38, %v230_v30  ;;  %v221_v18 = vmul.f32 0.6931472, %v453_v25  ;;  %v178_v38 = vadd.f32 1.0, %v177_v23 }
  0x2b   :  { %v457_v50 = vpop.eup %456  ;;  %383 = vmatpush3.msra.mxu0 %v270_v33  ;;  %v268_v0 = vadd.f32 %v236_v13, %v44_v56  ;;  %v188_v56 = vmul.f32 %v647_v45, %v187_v46  ;;  %v171_v36 = vand.u32 2147483647, %v657_v20  ;;  %470 = vlog2.f32 %v147_v22 }
  0x2c   :  { %384 = vmatprep.subr.mxu0 %v506_v3  ;;  %v227_v1 = vsel %vm670_vm4, %v224_v40, %v221_v18  ;;  %v212_v55 = vmul.f32 0.6931472, %v457_v50  ;;  %v459_v48 = vpop.eup %458  ;;  %v169_v62 = vadd.f32 1.0, %v168_v51  ;;  %v138_v14 = vadd.f32 1.0, %v689_v11 }
  0x2d   :  { %385 = vmatpush3.msra.mxu0 %v269_v42  ;;  %v267_v2 = vadd.f32 %v227_v1, %v43_v57  ;;  %v461_v17 = vpop.eup %460  ;;  %v203_v4 = vmul.f32 0.6931472, %v459_v48  ;;  %v150_v23 = vmul.f32 -0.5, %v668_v37  ;;  %v129_v8 = vadd.f32 1.0, %v700_v52 }
  0x2e   :  { %386 = vmatprep.subr.mxu0 %v506_v3  ;;  %v218_v40 = vsel %vm674_vm5, %v215_v47, %v212_v55  ;;  %v194_v57 = vmul.f32 0.6931472, %v461_v17  ;;  %v463_v30 = vpop.eup %462  ;;  %v179_v47 = vmul.f32 %v654_v53, %v178_v38  ;;  %472 = vlog2.f32 %v138_v14 }
  0x2f   :  { %387 = vmatpush3.msra.mxu0 %v268_v0  ;;  %v266_v7 = vadd.f32 %v218_v40, %v42_v60  ;;  %v209_v43 = vsel %vm680_vm6, %v206_v27, %v203_v4  ;;  %v185_v25 = vmul.f32 0.6931472, %v463_v30  ;;  %v170_v27 = vmul.f32 %v657_v20, %v169_v62 }
  0x30   :  { %388 = vmatprep.subr.mxu0 %v506_v3  ;;  %v265_v60 = vadd.f32 %v209_v43, %v41_v61  ;;  %v200_v24 = vsel %vm684_vm7, %v197_v54, %v194_v57  ;;  %v465_v33 = vpop.eup %464  ;;  %vm745_vm10 = vcmp.lt.f32.partialorder %v171_v36, 0.0004427343  ;;  %474 = vlog2.f32 %v129_v8 }
  0x31   :  { %389 = vmatpush3.msra.mxu0 %v267_v2  ;;  %v264_v12 = vadd.f32 %v200_v24, %v40_v6  ;;  %v191_v61 = vsel %vm714_vm8, %v188_v56, %v185_v25  ;;  %v176_v5 = vmul.f32 0.6931472, %v465_v33  ;;  %v162_v59 = vand.u32 2147483647, %v660_v26 }
  0x32   :  { %390 = vmatprep.subr.mxu0 %v506_v3  ;;  %v467_v46 = vpop.eup %466  ;;  %v36_v20 = vmax.f32 %v592_v32, 0.0  ;;  %v151_v51 = vadd.f32 1.0, %v150_v23  ;;  %v81_v42 = vmul.f32 1.442695, %v637_v34  ;;  %v79_v13 = vmul.f32 1.442695, %v641_v39 }
  0x33   :  { %391 = vmatpush3.msra.mxu0 %v266_v7  ;;  %v263_v15 = vadd.f32 %v191_v61, %v39_v9  ;;  %v182_v6 = vsel %vm728_vm9, %v179_v47, %v176_v5  ;;  %v167_v18 = vmul.f32 0.6931472, %v467_v46  ;;  %v141_v50 = vmul.f32 -0.5, %v689_v11 }
  0x34   :  { %392 = vmatprep.subr.mxu0 %v506_v3  ;;  %v161_v0 = vmul.f32 %v660_v26, %v160_v10  ;;  %v153_v32 = vand.u32 2147483647, %v668_v37  ;;  %v132_v34 = vmul.f32 -0.5, %v700_v52  ;;  %476 = vpow2.f32 %v81_v42  ;;  %v469_v39 = vpop.eup %468 }
  0x35   :  { %393 = vmatpush3.msra.mxu0 %v265_v60  ;;  %v262_v16 = vadd.f32 %v182_v6, %v38_v19  ;;  %v173_v9 = vsel %vm745_vm10, %v170_v27, %v167_v18  ;;  %vm771_vm11 = vcmp.lt.f32.partialorder %v162_v59, 0.0004427343  ;;  %478 = vpow2.f32 %v79_v13  ;;  %v271_v13 = vld [vmem:[%s807_s0] sm:$0xff] }
  0x36   :  { %394 = vmatprep.subr.mxu0 %v506_v3  ;;  %v158_v26 = vmul.f32 0.6931472, %v469_v39  ;;  %v261_v22 = vadd.f32 %v173_v9, %v833_v49  ;;  %v35_v1 = vmax.f32 %v598_v35, 0.0  ;;  %v152_v28 = vmul.f32 %v668_v37, %v151_v51 }
  0x37   :  { %395 = vmatpush3.msra.mxu0 %v264_v12  ;;  %v142_v19 = vadd.f32 1.0, %v141_v50  ;;  %vm154_vm12 = vcmp.lt.f32.partialorder %v153_v32, 0.0004427343  ;;  %v144_v38 = vand.u32 2147483647, %v689_v11  ;;  %v133_v48 = vadd.f32 1.0, %v132_v34 }
  0x38   :  { %396 = vmatprep.subr.mxu0 %v506_v3  ;;  %v471_v55 = vpop.eup %470  ;;  %v164_v31 = vsel %vm771_vm11, %v161_v0, %v158_v26  ;;  %v135_v29 = vand.u32 2147483647, %v700_v52  ;;  %v34_v40 = vmax.f32 %v605_v41, 0.0  ;;  %v33_v7 = vmax.f32 %v611_v44, 0.0 }
  0x39   :  { %397 = vmatpush3.msra.mxu0 %v263_v15  ;;  %v260_v2 = vadd.f32 %v164_v31, %v36_v20  ;;  %v149_v56 = vmul.f32 0.6931472, %v471_v55  ;;  %v143_v37 = vmul.f32 %v689_v11, %v142_v19  ;;  %vm145_vm13 = vcmp.lt.f32.partialorder %v144_v38, 0.0004427343 }
  0x3a   :  { %398 = vmatprep.subr.mxu0 %v506_v3  ;;  %v134_v4 = vmul.f32 %v700_v52, %v133_v48  ;;  %vm136_vm14 = vcmp.lt.f32.partialorder %v135_v29, 0.0004427343  ;;  %v32_v53 = vmax.f32 %v622_v58, 0.0  ;;  %v31_v5 = vmax.f32 %v629_v63, 0.0  ;;  %v364_v58 = vld [vmem:[%s809_s2] ss:$0 sm:$0xff] }
  0x3b   :  { %399 = vmatpush3.msra.mxu0 %v262_v16  ;;  %v155_v35 = vsel %vm154_vm12, %v152_v28, %v149_v56  ;;  %v473_v36 = vpop.eup %472 }
  0x3c   :  { %400 = vmatprep.subr.mxu0 %v506_v3  ;;  %v259_v17 = vadd.f32 %v155_v35, %v35_v1  ;;  %v140_v21 = vmul.f32 0.6931472, %v473_v36 }
  0x3d   :  { %401 = vmatpush3.msra.mxu0 %v261_v22  ;;  %v475_v62 = vpop.eup %474 }
  0x3e   :  { %402 = vmatprep.subr.mxu0 %v506_v3  ;;  %v131_v57 = vmul.f32 0.6931472, %v475_v62  ;;  %v146_v11 = vsel %vm145_vm13, %v143_v37, %v140_v21 }
  0x3f   :  { %403 = vmatpush3.msra.mxu0 %v260_v2  ;;  %v258_v45 = vadd.f32 %v146_v11, %v34_v40 }
  0x40   :  { %404 = vmatprep.subr.mxu0 %v506_v3  ;;  %v137_v14 = vsel %vm136_vm14, %v134_v4, %v131_v57 }
  0x41   :  { %405 = vmatpush3.msra.mxu0 %v259_v17  ;;  %v477_v30 = vpop.eup %476  ;;  %v257_v41 = vadd.f32 %v137_v14, %v33_v7 }
  0x42   :  { %406 = vmatprep.subr.mxu0 %v506_v3  ;;  %v479_v43 = vpop.eup %478  ;;  %v120_v52 = vadd.f32 1.0, %v477_v30  ;;  %v123_v44 = vmul.f32 -0.5, %v477_v30  ;;  %v126_v60 = vand.u32 2147483647, %v477_v30 }
  0x43   :  { %407 = vmatpush3.msra.mxu0 %v258_v45  ;;  %v111_v47 = vadd.f32 1.0, %v479_v43  ;;  %v114_v23 = vmul.f32 -0.5, %v479_v43  ;;  %v117_v25 = vand.u32 2147483647, %v479_v43 }
  0x44   :  { %408 = vmatprep.subr.mxu0 %v506_v3  ;;  %480 = vlog2.f32 %v120_v52  ;;  %v124_v8 = vadd.f32 1.0, %v123_v44  ;;  %vm127_vm15 = vcmp.lt.f32.partialorder %v126_v60, 0.0004427343 }
  0x45   :  { %409 = vmatpush3.msra.mxu0 %v257_v41  ;;  %482 = vlog2.f32 %v111_v47  ;;  %v115_v24 = vadd.f32 1.0, %v114_v23  ;;  %vm118_vm0 = vcmp.lt.f32.partialorder %v117_v25, 0.0004427343 }
  0x46   :  { %410 = vmatprep.subr.mxu0 %v506_v3  ;;  %v125_v33 = vmul.f32 %v477_v30, %v124_v8 }
  0x47   :  { %v116_v10 = vmul.f32 %v479_v43, %v115_v24 }
  0x51   :  { %v481_v27 = vpop.eup %480 }
  0x52   :  { %v483_v12 = vpop.eup %482  ;;  %v122_v61 = vmul.f32 0.6931472, %v481_v27 }
  0x53   :  { %v113_v59 = vmul.f32 0.6931472, %v483_v12 }
  0x54   :  { %v128_v46 = vsel %vm127_vm15, %v125_v33, %v122_v61 }
  0x55   :  { %v256_v20 = vadd.f32 %v128_v46, %v32_v53  ;;  %v119_v51 = vsel %vm118_vm0, %v116_v10, %v113_v59 }
  0x56   :  { %v255_v42 = vadd.f32 %v119_v51, %v31_v5 }
  0x57   :  { %411 = vmatpush3.msra.mxu0 %v256_v20 }
  0x58   :  { %412 = vmatprep.subr.mxu0 %v506_v3 }
  0x59   :  { %413 = vmatpush3.msra.mxu0 %v255_v42 }
  0x5a   :  { %415 = vmatmul.mubr.f32.vlgmr.msra.gmra.mxu0 %v271_v13 }
 0x11a   :  { %v345_v63 = vpop.f32.mrf.mxu0 }
 0x11b   :  { %v346_v15 = vadd.f32 %v364_v58, %v345_v63 }
 0x11c   :  { %v416_v6 = vpop.f32.mrf.mxu0 }
 0x11d   :  { %349 = vst [vmem:[#allocation2] sm:$0xff] %v346_v15 }
 0x11e   :  { %495 = shalt.err (!%p492_p4)
}
 0x11f   :  { %359 = dma.vmem_to_hbm [thread:$0]  %s357_s21, 128, %s810_s3, [#allocation3]  }
 0x120   :  { %504 = dma.done.wait [#allocation3], 128  }
 0x121   :  { %505 = vsyncadd [#allocation3], 4294967168 }
 0x122   :  { %363 = vsyncpa [#allocation3], 1 }

</bundles_post_ra>
